<compile_context>
chip_gen: v5e
topology: v5e:2x2
jax: 0.10.0
libtpu: 0.0.40
codegen_flags: <defaults>
</compile_context>

<pallas_src>
import numpy as np

import jax
import jax.numpy as jnp
from jax.experimental import pallas as pl
from jax.experimental.pallas import tpu as pltpu


# ----------------------------------------------------------------------------
# One-time probe of pltpu.roll's rotation direction (outside the hot path).
# We rely only on "out[:, p] = x[:, (p + delta) % n]" semantics in the kernel,
# so detect whether pltpu.roll matches np.roll and bake the sign statically.
# ----------------------------------------------------------------------------
_ROLL_NUMPY_LIKE = None


def _roll_probe_kernel(x_ref, o_ref):
    o_ref[...] = pltpu.roll(x_ref[...], shift=1, axis=1)


def _roll_is_numpy_like():
    """True iff pltpu.roll(x, s, axis) == np.roll(x, s, axis)."""
    global _ROLL_NUMPY_LIKE
    if _ROLL_NUMPY_LIKE is None:
        x = jnp.broadcast_to(jnp.arange(128, dtype=jnp.float32)[None, :], (8, 128))
        y = pl.pallas_call(
            _roll_probe_kernel,
            out_shape=jax.ShapeDtypeStruct((8, 128), jnp.float32),
        )(x)
        # np.roll(x, 1, axis=1)[:, 1] == x[:, 0] == 0
        _ROLL_NUMPY_LIKE = bool(float(jax.device_get(y)[0, 1]) == 0.0)
    return _ROLL_NUMPY_LIKE


# ----------------------------------------------------------------------------
# Fused whole-network kernel (built per static config)
# ----------------------------------------------------------------------------
def _build_kernel(H, W, n_enc, n_dec, roll_numpy):
    HW = H * W

    def lane_shift(x, delta):
        """out[:, p] = x[:, (p + delta) % HW]; OOB taps are masked by caller."""
        d = delta % HW
        if d == 0:
            return x
        shift = (HW - d) if roll_numpy else d
        return pltpu.roll(x, shift=shift, axis=1)

    def kernel(*refs):
        it = iter(refs)
        img_ref, msg_ref, masks_ref = next(it), next(it), next(it)
        enc_p = [(next(it), next(it), next(it)) for _ in range(n_enc)]
        ac_wmsg, ac_wfeat, ac_wimg = next(it), next(it), next(it)
        ac_scale, ac_shift = next(it), next(it)
        ef_w, ef_b = next(it), next(it)
        dec_p = [(next(it), next(it), next(it)) for _ in range(n_dec)]
        mh_w, mh_scale, mh_shift = next(it), next(it), next(it)
        lin_w, lin_b = next(it), next(it)
        rh_w, rh_b = next(it), next(it)
        enc_out_ref, msg_out_ref, rec_out_ref = next(it), next(it), next(it)

        def conv3x3(operands, scale, shift, msg=None):
            """Same-padded 3x3 conv + folded BN + ReLU, channel-major layout.

            operands: list of (x: (Cin, HW) value, wT_ref: (9, Cout, Cin) ref)
            msg:      optional (msg_row: (1, L), wT_ref: (9, Cout, L)) — a
                      spatially-constant (broadcast) input-channel block that
                      is folded in as a border-masked rank-1 contribution.
            """
            cout = scale.shape[0]
            acc = jnp.zeros((cout, HW), jnp.float32)
            for t in range(9):
                oy, ox = t // 3 - 1, t % 3 - 1
                delta = oy * W + ox
                mask = masks_ref[t]                          # (1, HW) in {0,1}
                for x, w_ref in operands:
                    xs = lane_shift(x, delta)
                    if delta != 0:                           # center tap: mask == 1
                        xs = xs * mask
                    acc = acc + jnp.dot(w_ref[t], xs,
                                        preferred_element_type=jnp.float32)
                if msg is not None:
                    msg_row, wmsg_ref = msg
                    proj = jnp.sum(wmsg_ref[t] * msg_row, axis=1, keepdims=True)
                    acc = acc + (proj * mask if delta != 0 else proj)
            return jnp.maximum(acc * scale + shift, 0.0)

        img = img_ref[...]                                   # (3, HW)
        msg_row = msg_ref[...]                               # (1, L)

        # ---------------- Encoder ----------------
        x = img
        for w_ref, s_ref, b_ref in enc_p:
            x = conv3x3([(x, w_ref)], s_ref[...], b_ref[...])
        # concat([message, feats, image]) -> ConvBNReLU, without materializing
        # the concatenated tensor anywhere.
        x = conv3x3([(x, ac_wfeat), (img, ac_wimg)],
                    ac_scale[...], ac_shift[...], msg=(msg_row, ac_wmsg))
        encoded = (jnp.dot(ef_w[...], x, preferred_element_type=jnp.float32)
                   + ef_b[...])                              # (3, HW)
        enc_out_ref[...] = encoded

        # ---------------- Noiser -----------------
        # TODO(synk): Noiser is an injected nn.Module dependency; identity noiser used.
        noised = encoded

        # ---------------- Decoder ----------------
        y = noised
        for w_ref, s_ref, b_ref in dec_p:
            y = conv3x3([(y, w_ref)], s_ref[...], b_ref[...])
        m = conv3x3([(y, mh_w)], mh_scale[...], mh_shift[...])          # (L, HW)
        pooled = jnp.sum(m, axis=1, keepdims=True) * (1.0 / HW)         # (L, 1)
        msg_out_ref[...] = (jnp.sum(lin_w[...] * pooled, axis=0, keepdims=True)
                            + lin_b[...])                               # (1, L)
        rec_out_ref[...] = (jnp.dot(rh_w[...], y,
                                    preferred_element_type=jnp.float32)
                            + rh_b[...])                                # (3, HW)

    return kernel


# ----------------------------------------------------------------------------
# Wrapper: layout plumbing only (reshapes / weight pre-transposes, no compute)
# ----------------------------------------------------------------------------
def _conv_wT(w):
    """(3, 3, Cin, Cout) conv weight -> (9, Cout, Cin) for C-major matmuls."""
    kh, kw, cin, cout = w.shape
    return jnp.transpose(w.reshape(kh * kw, cin, cout), (0, 2, 1))


def _col(v):
    return v.reshape(-1, 1)


def _tap_masks(H, W):
    """(9, 1, H*W) {0,1} masks implementing same-padding for the 9 conv taps."""
    HW = H * W
    p = np.arange(HW)
    py, px = p // W, p % W
    masks = np.zeros((9, 1, HW), np.float32)
    for t in range(9):
        oy, ox = t // 3 - 1, t % 3 - 1
        valid = ((py + oy >= 0) & (py + oy < H) &
                 (px + ox >= 0) & (px + ox < W))
        masks[t, 0] = valid.astype(np.float32)
    return masks


def encoder_decoder_forward(params, image_nchw, message):
    """image_nchw: (B, 3, H, W), message: (B, L) ->
    (encoded (B,3,H,W), noised (B,3,H,W), decoded (B,L), recovered (B,3,H,W))."""
    B, C, H, W = image_nchw.shape
    L = message.shape[-1]
    HW = H * W
    n_enc = len(params["enc_blocks"])
    n_dec = len(params["dec_blocks"])
    enc_ch = params["enc_blocks"][-1]["w"].shape[-1]

    img = image_nchw.astype(jnp.float32).reshape(B, C, HW)   # C-major, lane-dense
    msg = message.astype(jnp.float32).reshape(B, 1, L)
    masks = _tap_masks(H, W)

    # ---- flatten parameters into the kernel's positional layout ----
    p_arrays = []
    for blk in params["enc_blocks"]:
        p_arrays += [_conv_wT(blk["w"]), _col(blk["scale"]), _col(blk["shift"])]
    acw = params["after_concat"]["w"]            # (3, 3, L + enc_ch + 3, enc_ch)
    p_arrays += [
        _conv_wT(acw[:, :, :L, :]),                          # message channels
        _conv_wT(acw[:, :, L:L + enc_ch, :]),                # feature channels
        _conv_wT(acw[:, :, L + enc_ch:, :]),                 # cover-image channels
        _col(params["after_concat"]["scale"]),
        _col(params["after_concat"]["shift"]),
    ]
    p_arrays += [params["enc_final"]["w"].T, _col(params["enc_final"]["b"])]
    for blk in params["dec_blocks"]:
        p_arrays += [_conv_wT(blk["w"]), _col(blk["scale"]), _col(blk["shift"])]
    p_arrays += [_conv_wT(params["msg_head"]["w"]),
                 _col(params["msg_head"]["scale"]),
                 _col(params["msg_head"]["shift"])]
    p_arrays += [params["linear"]["w"], params["linear"]["b"].reshape(1, L)]
    p_arrays += [params["rec_head"]["w"].T, _col(params["rec_head"]["b"])]

    def _const_spec(shape):
        zeros = (0,) * len(shape)
        return pl.BlockSpec(shape, lambda b, _z=zeros: _z)

    in_specs = [
        pl.BlockSpec((None, C, HW), lambda b: (b, 0, 0)),    # image, one batch/step
        pl.BlockSpec((None, 1, L), lambda b: (b, 0, 0)),     # message
        _const_spec(masks.shape),                            # tap masks (constant)
    ] + [_const_spec(a.shape) for a in p_arrays]

    out_shape = (
        jax.ShapeDtypeStruct((B, 3, HW), jnp.float32),       # encoded image
        jax.ShapeDtypeStruct((B, 1, L), jnp.float32),        # decoded message
        jax.ShapeDtypeStruct((B, 3, HW), jnp.float32),       # recovered image
    )
    out_specs = [
        pl.BlockSpec((None, 3, HW), lambda b: (b, 0, 0)),
        pl.BlockSpec((None, 1, L), lambda b: (b, 0, 0)),
        pl.BlockSpec((None, 3, HW), lambda b: (b, 0, 0)),
    ]

    kernel = _build_kernel(H, W, n_enc, n_dec, _roll_is_numpy_like())

    encoded_flat, decoded, recovered_flat = pl.pallas_call(
        kernel,
        out_shape=out_shape,
        grid_spec=pltpu.PrefetchScalarGridSpec(
            num_scalar_prefetch=0,
            grid=(B,),
            in_specs=in_specs,
            out_specs=out_specs,
        ),
        compiler_params=pltpu.CompilerParams(
            dimension_semantics=("parallel",)),              # batch across cores
    )(img, msg, masks, *p_arrays)

    encoded = encoded_flat.reshape(B, 3, H, W)
    recovered = recovered_flat.reshape(B, 3, H, W)
    noised = encoded                                         # identity Noiser
    return encoded, noised, decoded.reshape(B, L), recovered


# ----------------------------------------------------------------------------
# Deterministic parameter initialization (BN folded into scale/shift)
# ----------------------------------------------------------------------------
def _bn_fold(conv_bias, gamma, beta, mean, var, eps=1e-5):
    scale = gamma / jnp.sqrt(var + eps)
    shift = beta + (conv_bias - mean) * scale
    return scale, shift


def _init_conv_bn(key, cin, cout):
    k1, k2 = jax.random.split(key)
    w = jax.random.normal(k1, (3, 3, cin, cout), jnp.float32) / jnp.sqrt(9.0 * cin)
    b = jax.random.normal(k2, (cout,), jnp.float32) * 0.01
    gamma = jnp.ones((cout,), jnp.float32)
    beta = jnp.zeros((cout,), jnp.float32)
    mean = jnp.zeros((cout,), jnp.float32)
    var = jnp.ones((cout,), jnp.float32)
    scale, shift = _bn_fold(b, gamma, beta, mean, var)
    return dict(w=w, scale=scale, shift=shift)


def init_params(key, *, msg_len, enc_ch, dec_ch, enc_blocks, dec_blocks):
    keys = jax.random.split(key, 16)
    p = {}
    p["enc_blocks"] = [_init_conv_bn(keys[0], 3, enc_ch)]
    for i in range(1, enc_blocks):
        p["enc_blocks"].append(_init_conv_bn(keys[i], enc_ch, enc_ch))
    p["after_concat"] = _init_conv_bn(keys[5], enc_ch + 3 + msg_len, enc_ch)
    p["enc_final"] = dict(
        w=jax.random.normal(keys[6], (enc_ch, 3), jnp.float32) / jnp.sqrt(enc_ch * 1.0),
        b=jnp.zeros((3,), jnp.float32),
    )
    p["dec_blocks"] = [_init_conv_bn(keys[7], 3, dec_ch)]
    for i in range(1, dec_blocks):
        p["dec_blocks"].append(_init_conv_bn(keys[7 + i], dec_ch, dec_ch))
    p["msg_head"] = _init_conv_bn(keys[12], dec_ch, msg_len)
    p["linear"] = dict(
        w=jax.random.normal(keys[13], (msg_len, msg_len), jnp.float32)
        / jnp.sqrt(msg_len * 1.0),
        b=jax.random.normal(keys[14], (msg_len,), jnp.float32) * 0.01,
    )
    p["rec_head"] = dict(
        w=jax.random.normal(keys[15], (dec_ch, 3), jnp.float32) / jnp.sqrt(dec_ch * 1.0),
        b=jnp.zeros((3,), jnp.float32),
    )
    return p


# ----------------------------------------------------------------------------
# Pure-JAX/XLA reference (for numerical validation of the Pallas kernel)
# ----------------------------------------------------------------------------
def reference_forward(params, image_nchw, message):
    hp = jax.lax.Precision.HIGHEST
    img = jnp.transpose(image_nchw, (0, 2, 3, 1))            # NHWC
    B, H, W, _ = img.shape
    L = message.shape[-1]

    def conv3(x, w, scale, shift):
        y = jax.lax.conv_general_dilated(
            x, w, (1, 1), "SAME",
            dimension_numbers=("NHWC", "HWIO", "NHWC"), precision=hp)
        return jnp.maximum(y * scale + shift, 0.0)

    def conv1(x, w, b):
        return jnp.einsum("bhwc,cd->bhwd", x, w, precision=hp) + b

    x = img
    for blk in params["enc_blocks"]:
        x = conv3(x, blk["w"], blk["scale"], blk["shift"])
    expanded = jnp.broadcast_to(message[:, None, None, :], (B, H, W, L))
    concat = jnp.concatenate([expanded, x, img], axis=-1)
    x = conv3(concat, params["after_concat"]["w"],
              params["after_concat"]["scale"], params["after_concat"]["shift"])
    encoded = conv1(x, params["enc_final"]["w"], params["enc_final"]["b"])
    noised = encoded
    y = noised
    for blk in params["dec_blocks"]:
        y = conv3(y, blk["w"], blk["scale"], blk["shift"])
    m = conv3(y, params["msg_head"]["w"], params["msg_head"]["scale"],
              params["msg_head"]["shift"])
    pooled = jnp.mean(m, axis=(1, 2))
    decoded = jnp.dot(pooled, params["linear"]["w"], precision=hp) + params["linear"]["b"]
    recovered = conv1(y, params["rec_head"]["w"], params["rec_head"]["b"])
    to_nchw = lambda t: jnp.transpose(t, (0, 3, 1, 2))
    return to_nchw(encoded), to_nchw(noised), decoded, to_nchw(recovered)


# ----------------------------------------------------------------------------
if __name__ == "__main__":
    B, H, W = 2, 16, 16
    MSG_LEN = 8
    ENC_CH, DEC_CH = 16, 16
    ENC_BLOCKS, DEC_BLOCKS = 2, 3

    key = jax.random.PRNGKey(0)
    k_img, k_msg, k_params = jax.random.split(key, 3)

    image = jax.random.normal(k_img, (B, 3, H, W), jnp.float32)          # NCHW cover
    message = (jax.random.uniform(k_msg, (B, MSG_LEN)) > 0.5).astype(jnp.float32)

    params = init_params(
        k_params, msg_len=MSG_LEN, enc_ch=ENC_CH, dec_ch=DEC_CH,
        enc_blocks=ENC_BLOCKS, dec_blocks=DEC_BLOCKS,
    )

    _roll_is_numpy_like()   # warm the one-time roll-direction probe outside jit

    fwd = jax.jit(encoder_decoder_forward)
    outs = fwd(params, image, message)
    jax.block_until_ready(outs)
    encoded_image, noised_image, decoded_message, recovered_image = outs

    assert encoded_image.shape == (B, 3, H, W)
    assert noised_image.shape == (B, 3, H, W)
    assert decoded_message.shape == (B, MSG_LEN)
    assert recovered_image.shape == (B, 3, H, W)

    # Numerical sanity check vs a pure-JAX/XLA reference of the same network.
    ref = reference_forward(params, image, message)
    for got, want in zip(outs, ref):
        np.testing.assert_allclose(np.asarray(got), np.asarray(want),
                                   rtol=2e-2, atol=2e-2)

    print("KERNEL_OK")
</pallas_src>

<mosaic_0001>
module attributes {stable_mosaic.version = 11 : i64} {
  func.func @_roll_probe_kernel(%arg0: memref<8x128xf32, #tpu.memory_space<vmem>>, %arg1: memref<8x128xf32, #tpu.memory_space<vmem>>) attributes {dimension_semantics = [], scalar_prefetch = 0 : i64, scratch_operands = 0 : i64, tpu.core_type = #tpu.core_type<tc>} {
    %c0 = arith.constant 0 : index
    %c0_0 = arith.constant 0 : index
    %0 = vector.load %arg0[%c0, %c0_0] : memref<8x128xf32, #tpu.memory_space<vmem>>, vector<8x128xf32>
    %c1_i32 = arith.constant 1 : i32
    %1 = tpu.dynamic_rotate %0 by %c1_i32 dim 1 : vector<8x128xf32>, i32 -> vector<8x128xf32>
    %c0_1 = arith.constant 0 : index
    %c0_2 = arith.constant 0 : index
    %2 = vector.load %arg1[%c0_1, %c0_2] : memref<8x128xf32, #tpu.memory_space<vmem>>, vector<8x128xf32>
    tpu.vector_store %arg1[%c0_1, %c0_2], %1 {strides = array<i32>} : memref<8x128xf32, #tpu.memory_space<vmem>>, vector<8x128xf32>,
    return
  }
}

</mosaic_0001>

<bundles_post_ra>
// kernel: tpu_custom_call.1
= control target key start
LH: loop header
LB: loop body
LE: loop exit
PB: predicated region body
PF: predicated region fallthrough
CT: control target
= control target key end

     0   :  { %6 = vsyncpa [#allocation3], 0  ;;  %s118_s0 = inlined_call_operand.hbm [shape: f32[8,128], index: 0, kind: input, shape index: {}]   ;;  %s119_s1 = inlined_call_operand.hbm [shape: f32[8,128], index: 1, kind: output, shape index: {}]  }
   0x1   :  { %7 = vsyncpa [#allocation4], 0  ;;  %s13_s8 = sshll.u32 %s118_s0, 4  ;;  %s99_s9 = smov [#allocation2]   ;;  %s14_s8 = int_to_ptr.hbm [resolvable:$true] %s13_s8 }
   0x2   :  { %s15_s10 = sshll.u32 %s99_s9, 4  ;;  %s16_s10 = int_to_ptr.vmem [resolvable:$true] %s15_s10 }
   0x3   :  { %18 = dma.hbm_to_vmem [thread:$0]  %s14_s8, 128, %s16_s10, [#allocation3]  }
   0x4   :  { %95 = dma.done.wait [#allocation3], 128  }
   0x5   :  { %96 = vsyncadd [#allocation3], 4294967168  ;;  %v23_v0 = vld [vmem:[#allocation2] sm:$0xff]  ;;  %s100_s11 = smov 1   ;;  %s101_s12 = smov [#allocation5]  }
   0x6   :  { %24 = vrot.lane.b32.xlu0 %v23_v0, %s100_s11  ;;  %s32_s13 = sshll.u32 %s101_s12, 4  ;;  %s34_s16 = sshll.u32 %s119_s1, 4  ;;  %s33_s13 = int_to_ptr.vmem [resolvable:$true] %s32_s13  ;;  %s35_s16 = int_to_ptr.hbm [resolvable:$true] %s34_s16 }
  0x78   :  { %v25_v1 = vpop.permute.xlu0 %24 }
  0x79   :  { %26 = vst [vmem:[#allocation5] sm:$0xff] %v25_v1 }
  0x7a   :  { %37 = dma.vmem_to_hbm [thread:$0]  %s33_s13, 128, %s35_s16, [#allocation4]  }
  0x7b   :  { %97 = dma.done.wait [#allocation4], 128  }
  0x7c   :  { %98 = vsyncadd [#allocation4], 4294967168 }
  0x7d   :  { %42 = vsyncpa [#allocation3], 1 }
  0x7e   :  { %43 = vsyncpa [#allocation4], 1 }

</bundles_post_ra>
